<compile_context>
chip_gen: v7x
topology: tpu7x:2x2x1
jax: 0.10.0
libtpu: 0.0.40
codegen_flags: <defaults>
</compile_context>

<pallas_src>
import functools
import math

import jax
import jax.numpy as jnp
from jax import lax
from jax.experimental import pallas as pl
from jax.experimental.pallas import tpu as pltpu

_LANE = 128      # TPU vreg lane width (last dim alignment)
_SUBLANE = 8     # f32 sublane alignment (second-to-last dim)


def _round_up(n, m):
    return ((n + m - 1) // m) * m


def _gelu_exact(x):
    # PyTorch nn.GELU() default: 0.5 * x * (1 + erf(x / sqrt(2)))
    return 0.5 * x * (1.0 + lax.erf(x * (1.0 / math.sqrt(2.0))))


def mlp_kernel(x_ref, w1_ref, b1_ref, w2_ref, b2_ref, w3_ref, b3_ref, o_ref):
    x = x_ref[...]

    # hid1 + GELU  (dropout = identity in eval mode)
    h = jnp.dot(x, w1_ref[...], preferred_element_type=jnp.float32) + b1_ref[...]
    h = _gelu_exact(h)
    # TODO(synk): training-mode dropout (p=0.2) not implemented; eval-mode identity.

    # hid2 + GELU
    h = jnp.dot(h.astype(w2_ref.dtype), w2_ref[...],
                preferred_element_type=jnp.float32) + b2_ref[...]
    h = _gelu_exact(h)

    # out + Sigmoid
    y = jnp.dot(h.astype(w3_ref.dtype), w3_ref[...],
                preferred_element_type=jnp.float32) + b3_ref[...]
    o_ref[...] = jax.nn.sigmoid(y).astype(o_ref.dtype)


def _pad2d(a, rows, cols):
    pr, pc = rows - a.shape[0], cols - a.shape[1]
    if pr == 0 and pc == 0:
        return a
    return jnp.pad(a, ((0, pr), (0, pc)))


def _pad_bias(b, cols):
    pc = cols - b.shape[0]
    if pc:
        b = jnp.pad(b, (0, pc))
    return b.reshape(1, cols).astype(jnp.float32)


@functools.partial(jax.jit, static_argnames=("tile_b", "use_bf16"))
def mlp_forward(x, w1, b1, w2, b2, w3, b3, *, tile_b=256, use_bf16=False):
    B, d_in = x.shape
    h1, h2, d_out = w1.shape[1], w2.shape[1], w3.shape[1]
    out_dtype = x.dtype

    # Lane-align all feature dims (zero padding is exact for Linear+GELU).
    d_in_p = _round_up(d_in, _LANE)
    h1_p = _round_up(h1, _LANE)
    h2_p = _round_up(h2, _LANE)
    d_out_p = _round_up(d_out, _LANE)

    # Batch tile: as large as requested, but never larger than (padded) batch.
    tile = min(tile_b, _round_up(B, _SUBLANE))
    B_p = _round_up(B, tile)
    grid = (B_p // tile,)

    cdtype = jnp.bfloat16 if use_bf16 else x.dtype
    xp = _pad2d(x.astype(cdtype), B_p, d_in_p)
    w1p = _pad2d(w1.astype(cdtype), d_in_p, h1_p)
    w2p = _pad2d(w2.astype(cdtype), h1_p, h2_p)
    w3p = _pad2d(w3.astype(cdtype), h2_p, d_out_p)
    b1p = _pad_bias(b1, h1_p)   # f32 bias, broadcast inside kernel
    b2p = _pad_bias(b2, h2_p)
    b3p = _pad_bias(b3, d_out_p)

    # Explicit VMEM budget: double-buffered x/out tiles + (double-buffered)
    # resident weights + f32 intermediates, with headroom.
    wsz = jnp.dtype(cdtype).itemsize
    osz = jnp.dtype(out_dtype).itemsize
    weight_bytes = (d_in_p * h1_p + h1_p * h2_p + h2_p * d_out_p) * wsz
    io_bytes = 2 * tile * (d_in_p * wsz + d_out_p * osz)
    inter_bytes = 2 * tile * (h1_p + h2_p) * 4
    bias_bytes = 2 * (h1_p + h2_p + d_out_p) * 4
    needed = 2 * weight_bytes + io_bytes + inter_bytes + bias_bytes
    vmem_limit = int(min(max(2 * needed, 32 * 1024 * 1024), 100 * 1024 * 1024))

    cost = pl.CostEstimate(
        flops=2 * B_p * (d_in_p * h1_p + h1_p * h2_p + h2_p * d_out_p),
        transcendentals=B_p * (h1_p + h2_p + d_out_p),
        bytes_accessed=int(B_p * d_in_p * wsz + weight_bytes
                           + (h1_p + h2_p + d_out_p) * 4
                           + B_p * d_out_p * osz),
    )

    out_p = pl.pallas_call(
        mlp_kernel,
        out_shape=jax.ShapeDtypeStruct((B_p, d_out_p), out_dtype),
        grid_spec=pltpu.PrefetchScalarGridSpec(
            num_scalar_prefetch=0,
            grid=grid,
            in_specs=[
                pl.BlockSpec((tile, d_in_p), lambda i: (i, 0)),    # x tile
                pl.BlockSpec((d_in_p, h1_p), lambda i: (0, 0)),    # W1 (resident)
                pl.BlockSpec((1, h1_p), lambda i: (0, 0)),         # b1
                pl.BlockSpec((h1_p, h2_p), lambda i: (0, 0)),      # W2 (resident)
                pl.BlockSpec((1, h2_p), lambda i: (0, 0)),         # b2
                pl.BlockSpec((h2_p, d_out_p), lambda i: (0, 0)),   # W3 (resident)
                pl.BlockSpec((1, d_out_p), lambda i: (0, 0)),      # b3
            ],
            out_specs=pl.BlockSpec((tile, d_out_p), lambda i: (i, 0)),
        ),
        compiler_params=pltpu.CompilerParams(
            dimension_semantics=("parallel",),   # batch axis shardable across TCs
            vmem_limit_bytes=vmem_limit,
        ),
        cost_estimate=cost,
    )(xp, w1p, b1p, w2p, b2p, w3p, b3p)

    return out_p[:B, :d_out]


def init_params(key, d_in, h1, h2, d_out):
    # Mirrors Mlp.init_normal(): weights ~ N(0, 0.01), biases = 0.
    k1, k2, k3 = jax.random.split(key, 3)
    w1 = 0.01 * jax.random.normal(k1, (d_in, h1), jnp.float32)
    w2 = 0.01 * jax.random.normal(k2, (h1, h2), jnp.float32)
    w3 = 0.01 * jax.random.normal(k3, (h2, d_out), jnp.float32)
    b1 = jnp.zeros((h1,), jnp.float32)
    b2 = jnp.zeros((h2,), jnp.float32)
    b3 = jnp.zeros((d_out,), jnp.float32)
    return w1, b1, w2, b2, w3, b3


def mlp_reference(x, w1, b1, w2, b2, w3, b3):
    h = _gelu_exact(x @ w1 + b1)
    h = _gelu_exact(h @ w2 + b2)
    return jax.nn.sigmoid(h @ w3 + b3)


if __name__ == "__main__":
    key = jax.random.PRNGKey(0)
    kx, kp = jax.random.split(key)

    # Small feature dims per the module; batch sized so the grid has >1 step.
    B, d_in, h1, h2, d_out = 256, 16, 32, 32, 8
    x = jax.random.normal(kx, (B, d_in), jnp.float32)
    params = init_params(kp, d_in, h1, h2, d_out)

    ref = mlp_reference(x, *params)

    # f32 path (tight tolerance vs reference)
    out = mlp_forward(x, *params, tile_b=128)
    out = jax.block_until_ready(out)
    assert out.shape == (B, d_out)
    assert jnp.allclose(out, ref, atol=1e-5, rtol=1e-5), "f32 mismatch vs reference"

    # bf16 MXU path (f32 accumulation; looser tolerance)
    out_bf16 = mlp_forward(x, *params, tile_b=128, use_bf16=True)
    out_bf16 = jax.block_until_ready(out_bf16)
    assert out_bf16.shape == (B, d_out)
    assert jnp.allclose(out_bf16, ref, atol=5e-3, rtol=5e-3), "bf16 mismatch vs reference"

    print("KERNEL_OK")
</pallas_src>

<mosaic_0001>
module attributes {stable_mosaic.version = 11 : i64} {
  func.func @mlp_kernel(%arg0: i32, %arg1: memref<128x128xf32, #tpu.memory_space<vmem>>, %arg2: memref<128x128xf32, #tpu.memory_space<vmem>>, %arg3: memref<1x128xf32, #tpu.memory_space<vmem>>, %arg4: memref<128x128xf32, #tpu.memory_space<vmem>>, %arg5: memref<1x128xf32, #tpu.memory_space<vmem>>, %arg6: memref<128x128xf32, #tpu.memory_space<vmem>>, %arg7: memref<1x128xf32, #tpu.memory_space<vmem>>, %arg8: memref<128x128xf32, #tpu.memory_space<vmem>>) attributes {dimension_semantics = [#tpu.dimension_semantics<parallel>], iteration_bounds = array<i64: 2>, scalar_prefetch = 0 : i64, scratch_operands = 0 : i64, tpu.core_type = #tpu.core_type<tc>, window_params = [{transform_indices = @transform_0, window_bounds = array<i64: 128, 128>}, {pipeline_mode = #tpu.pipeline_mode<synchronous>, transform_indices = @transform_1, window_bounds = array<i64: 128, 128>}, {pipeline_mode = #tpu.pipeline_mode<synchronous>, transform_indices = @transform_2, window_bounds = array<i64: 1, 128>}, {pipeline_mode = #tpu.pipeline_mode<synchronous>, transform_indices = @transform_3, window_bounds = array<i64: 128, 128>}, {pipeline_mode = #tpu.pipeline_mode<synchronous>, transform_indices = @transform_4, window_bounds = array<i64: 1, 128>}, {pipeline_mode = #tpu.pipeline_mode<synchronous>, transform_indices = @transform_5, window_bounds = array<i64: 128, 128>}, {pipeline_mode = #tpu.pipeline_mode<synchronous>, transform_indices = @transform_6, window_bounds = array<i64: 1, 128>}, {transform_indices = @transform_7, window_bounds = array<i64: 128, 128>}]} {
    %c0 = arith.constant 0 : index
    %c0_0 = arith.constant 0 : index
    %0 = vector.load %arg1[%c0, %c0_0] : memref<128x128xf32, #tpu.memory_space<vmem>>, vector<128x128xf32>
    %c0_1 = arith.constant 0 : index
    %c0_2 = arith.constant 0 : index
    %1 = vector.load %arg2[%c0_1, %c0_2] : memref<128x128xf32, #tpu.memory_space<vmem>>, vector<128x128xf32>
    %cst = arith.constant dense<0.000000e+00> : vector<128x128xf32>
    %2 = tpu.matmul %0, %1, %cst {dimension_numbers = #tpu.dot_dimension_numbers<[1], [0], [0], [1], [0, 0, 1, 1], [], []>} : vector<128x128xf32>, vector<128x128xf32>, vector<128x128xf32> -> vector<128x128xf32>
    %c0_3 = arith.constant 0 : index
    %c0_4 = arith.constant 0 : index
    %3 = vector.load %arg3[%c0_3, %c0_4] : memref<1x128xf32, #tpu.memory_space<vmem>>, vector<1x128xf32>
    %4 = vector.broadcast %3 : vector<1x128xf32> to vector<128x128xf32>
    %5 = arith.addf %2, %4 : vector<128x128xf32>
    %cst_5 = arith.constant 5.000000e-01 : f32
    %6 = vector.broadcast %cst_5 : f32 to vector<128x128xf32>
    %7 = arith.mulf %6, %5 : vector<128x128xf32>
    %cst_6 = arith.constant 0.707106769 : f32
    %8 = vector.broadcast %cst_6 : f32 to vector<128x128xf32>
    %9 = arith.mulf %5, %8 : vector<128x128xf32>
    %10 = math.erf %9 : vector<128x128xf32>
    %cst_7 = arith.constant 1.000000e+00 : f32
    %11 = vector.broadcast %cst_7 : f32 to vector<128x128xf32>
    %12 = arith.addf %11, %10 : vector<128x128xf32>
    %13 = arith.mulf %7, %12 : vector<128x128xf32>
    %c0_8 = arith.constant 0 : index
    %c0_9 = arith.constant 0 : index
    %14 = vector.load %arg4[%c0_8, %c0_9] : memref<128x128xf32, #tpu.memory_space<vmem>>, vector<128x128xf32>
    %cst_10 = arith.constant dense<0.000000e+00> : vector<128x128xf32>
    %15 = tpu.matmul %13, %14, %cst_10 {dimension_numbers = #tpu.dot_dimension_numbers<[1], [0], [0], [1], [0, 0, 1, 1], [], []>} : vector<128x128xf32>, vector<128x128xf32>, vector<128x128xf32> -> vector<128x128xf32>
    %c0_11 = arith.constant 0 : index
    %c0_12 = arith.constant 0 : index
    %16 = vector.load %arg5[%c0_11, %c0_12] : memref<1x128xf32, #tpu.memory_space<vmem>>, vector<1x128xf32>
    %17 = vector.broadcast %16 : vector<1x128xf32> to vector<128x128xf32>
    %18 = arith.addf %15, %17 : vector<128x128xf32>
    %cst_13 = arith.constant 5.000000e-01 : f32
    %19 = vector.broadcast %cst_13 : f32 to vector<128x128xf32>
    %20 = arith.mulf %19, %18 : vector<128x128xf32>
    %cst_14 = arith.constant 0.707106769 : f32
    %21 = vector.broadcast %cst_14 : f32 to vector<128x128xf32>
    %22 = arith.mulf %18, %21 : vector<128x128xf32>
    %23 = math.erf %22 : vector<128x128xf32>
    %cst_15 = arith.constant 1.000000e+00 : f32
    %24 = vector.broadcast %cst_15 : f32 to vector<128x128xf32>
    %25 = arith.addf %24, %23 : vector<128x128xf32>
    %26 = arith.mulf %20, %25 : vector<128x128xf32>
    %c0_16 = arith.constant 0 : index
    %c0_17 = arith.constant 0 : index
    %27 = vector.load %arg6[%c0_16, %c0_17] : memref<128x128xf32, #tpu.memory_space<vmem>>, vector<128x128xf32>
    %cst_18 = arith.constant dense<0.000000e+00> : vector<128x128xf32>
    %28 = tpu.matmul %26, %27, %cst_18 {dimension_numbers = #tpu.dot_dimension_numbers<[1], [0], [0], [1], [0, 0, 1, 1], [], []>} : vector<128x128xf32>, vector<128x128xf32>, vector<128x128xf32> -> vector<128x128xf32>
    %c0_19 = arith.constant 0 : index
    %c0_20 = arith.constant 0 : index
    %29 = vector.load %arg7[%c0_19, %c0_20] : memref<1x128xf32, #tpu.memory_space<vmem>>, vector<1x128xf32>
    %30 = vector.broadcast %29 : vector<1x128xf32> to vector<128x128xf32>
    %31 = arith.addf %28, %30 : vector<128x128xf32>
    %32 = arith.negf %31 : vector<128x128xf32>
    %33 = math.exp %32 : vector<128x128xf32>
    %cst_21 = arith.constant 1.000000e+00 : f32
    %34 = vector.broadcast %cst_21 : f32 to vector<128x128xf32>
    %35 = arith.addf %34, %33 : vector<128x128xf32>
    %36 = arith.divf %34, %35 : vector<128x128xf32>
    %c0_22 = arith.constant 0 : index
    %c0_23 = arith.constant 0 : index
    %37 = vector.load %arg8[%c0_22, %c0_23] : memref<128x128xf32, #tpu.memory_space<vmem>>, vector<128x128xf32>
    tpu.vector_store %arg8[%c0_22, %c0_23], %36 {strides = array<i32>} : memref<128x128xf32, #tpu.memory_space<vmem>>, vector<128x128xf32>,
    return
  }
  func.func @transform_0(%arg0: i32) -> (i32, i32) {
    %c0_i32 = arith.constant 0 : i32
    %c0_i32_0 = arith.constant 0 : i32
    return %arg0, %c0_i32 : i32, i32
  }
  func.func @transform_1(%arg0: i32) -> (i32, i32) {
    %c0_i32 = arith.constant 0 : i32
    %c0_i32_0 = arith.constant 0 : i32
    %c0_i32_1 = arith.constant 0 : i32
    return %c0_i32, %c0_i32_0 : i32, i32
  }
  func.func @transform_2(%arg0: i32) -> (i32, i32) {
    %c0_i32 = arith.constant 0 : i32
    %c0_i32_0 = arith.constant 0 : i32
    %c0_i32_1 = arith.constant 0 : i32
    return %c0_i32, %c0_i32_0 : i32, i32
  }
  func.func @transform_3(%arg0: i32) -> (i32, i32) {
    %c0_i32 = arith.constant 0 : i32
    %c0_i32_0 = arith.constant 0 : i32
    %c0_i32_1 = arith.constant 0 : i32
    return %c0_i32, %c0_i32_0 : i32, i32
  }
  func.func @transform_4(%arg0: i32) -> (i32, i32) {
    %c0_i32 = arith.constant 0 : i32
    %c0_i32_0 = arith.constant 0 : i32
    %c0_i32_1 = arith.constant 0 : i32
    return %c0_i32, %c0_i32_0 : i32, i32
  }
  func.func @transform_5(%arg0: i32) -> (i32, i32) {
    %c0_i32 = arith.constant 0 : i32
    %c0_i32_0 = arith.constant 0 : i32
    %c0_i32_1 = arith.constant 0 : i32
    return %c0_i32, %c0_i32_0 : i32, i32
  }
  func.func @transform_6(%arg0: i32) -> (i32, i32) {
    %c0_i32 = arith.constant 0 : i32
    %c0_i32_0 = arith.constant 0 : i32
    %c0_i32_1 = arith.constant 0 : i32
    return %c0_i32, %c0_i32_0 : i32, i32
  }
  func.func @transform_7(%arg0: i32) -> (i32, i32) {
    %c0_i32 = arith.constant 0 : i32
    %c0_i32_0 = arith.constant 0 : i32
    return %arg0, %c0_i32 : i32, i32
  }
}

</mosaic_0001>

<bundles_post_ra>
// kernel: mlp_forward.1
= control target key start
LH: loop header
LB: loop body
LE: loop exit
PB: predicated region body
PF: predicated region fallthrough
CT: control target
= control target key end

     0   :  { %s1720_s24 = smov 0   ;;  %s2033_s0 = inlined_call_operand.vmem [shape: f32[256,128], index: 0, kind: input, shape index: {}]   ;;  %s2034_s1 = inlined_call_operand.vmem [shape: f32[128,128], index: 1, kind: input, shape index: {}]   ;;  %s2035_s2 = inlined_call_operand.vmem [shape: f32[1,128], index: 2, kind: input, shape index: {}]   ;;  %s2036_s3 = inlined_call_operand.vmem [shape: f32[128,128], index: 3, kind: input, shape index: {}]   ;;  %s2037_s4 = inlined_call_operand.vmem [shape: f32[1,128], index: 4, kind: input, shape index: {}]   ;;  %s2038_s5 = inlined_call_operand.vmem [shape: f32[128,128], index: 5, kind: input, shape index: {}]   ;;  %s2039_s6 = inlined_call_operand.vmem [shape: f32[1,128], index: 6, kind: input, shape index: {}]   ;;  %s2040_s7 = inlined_call_operand.vmem [shape: f32[256,128], index: 7, kind: output, shape index: {}]  }
   0x1 LB: > { %s1130_s25 = sadd.s32 4294967295, %s1678_s24   ;;  %p1134_p0 = scmp.ge.s32.totalorder %s1678_s24, 1  ;;  %s1678_s24 = sphi %s1720_s24, %s17_s24  }
   0x2   : > { %p238_p1 = scmp.lt.s32.totalorder %s1678_s24, 3 }
   0x4   : > { %p239_p2 = pnand %p1134_p0, %p238_p1 }
   0x5   : > { %v298_v0 = vld [vmem:[%s2034_s1] sm:$0xff] (!%p239_p2)  ;;  %v299_v1 = vld [vmem:[%s2034_s1 + $0x8] sm:$0xff] (!%p239_p2)  ;;  %v300_v2 = vld [vmem:[%s2034_s1 + $0x10] sm:$0xff] (!%p239_p2)  ;;  %s1135_s9 = sshll.u32 (!%p239_p2), %s1130_s25, 4 }
   0x6   : > { %242 = sbr.rel (%p239_p2) target bundleno = 778 (0x30a), region = 48  ;;  %v1424_v3 = vpack.c.bf16 (!%p239_p2), %v299_v1, %v298_v0  ;;  %v301_v4 = vld [vmem:[%s2034_s1 + $0x18] sm:$0xff] (!%p239_p2)  ;;  %p271_p3 = scmp.lt.s32.totalorder (!%p239_p2), %s1135_s9, 31  ;;  %v302_v6 = vld [vmem:[%s2034_s1 + $0x20] sm:$0xff] (!%p239_p2)  ;;  %v303_v7 = vld [vmem:[%s2034_s1 + $0x28] sm:$0xff] (!%p239_p2) }
   0x7   : > { %v1428_v5 = vpack.c.bf16 (!%p239_p2), %v301_v4, %v300_v2  ;;  %v1432_v8 = vpack.c.bf16 (!%p239_p2), %v303_v7, %v302_v6  ;;  %v304_v9 = vld [vmem:[%s2034_s1 + $0x30] sm:$0xff] (!%p239_p2)  ;;  %v546_v10 = vld [vmem:[%s2036_s3] sm:$0xff] (!%p239_p2)  ;;  %v547_v11 = vld [vmem:[%s2036_s3 + $0x8] sm:$0xff] (!%p239_p2) }
   0x8   : > { %1425 = vmatprep.subr.bf16.mxu0 (!%p239_p2), %v1424_v3  ;;  %v305_v12 = vld [vmem:[%s2034_s1 + $0x38] sm:$0xff] (!%p239_p2)  ;;  %v1456_v13 = vpack.c.bf16 (!%p239_p2), %v547_v11, %v546_v10  ;;  %v548_v14 = vld [vmem:[%s2036_s3 + $0x10] sm:$0xff] (!%p239_p2)  ;;  %v306_v19 = vld [vmem:[%s2034_s1 + $0x40] sm:$0xff] (!%p239_p2) }
   0x9   : > { %1427 = vmatpush3.bf16.msra.mxu0 (!%p239_p2), %v1424_v3  ;;  %v549_v15 = vld [vmem:[%s2036_s3 + $0x18] sm:$0xff] (!%p239_p2)  ;;  %v1436_v18 = vpack.c.bf16 (!%p239_p2), %v305_v12, %v304_v9  ;;  %v307_v20 = vld [vmem:[%s2034_s1 + $0x48] sm:$0xff] (!%p239_p2)  ;;  %v550_v21 = vld [vmem:[%s2036_s3 + $0x20] sm:$0xff] (!%p239_p2) }
   0xa   : > { %1429 = vmatprep.subr.bf16.mxu0 (!%p239_p2), %v1428_v5  ;;  %v1460_v17 = vpack.c.bf16 (!%p239_p2), %v549_v15, %v548_v14  ;;  %1457 = vmatprep.subr.bf16.mxu1 (!%p239_p2), %v1456_v13  ;;  %v551_v22 = vld [vmem:[%s2036_s3 + $0x28] sm:$0xff] (!%p239_p2)  ;;  %v1440_v23 = vpack.c.bf16 (!%p239_p2), %v307_v20, %v306_v19  ;;  %v308_v25 = vld [vmem:[%s2034_s1 + $0x50] sm:$0xff] (!%p239_p2)  ;;  %v309_v26 = vld [vmem:[%s2034_s1 + $0x58] sm:$0xff] (!%p239_p2) }
   0xb   : > { %1459 = vmatpush3.bf16.msra.mxu1 (!%p239_p2), %v1456_v13  ;;  %v1464_v24 = vpack.c.bf16 (!%p239_p2), %v551_v22, %v550_v21  ;;  %v1444_v27 = vpack.c.bf16 (!%p239_p2), %v309_v26, %v308_v25  ;;  %v310_v28 = vld [vmem:[%s2034_s1 + $0x60] sm:$0xff] (!%p239_p2)  ;;  %v311_v29 = vld [vmem:[%s2034_s1 + $0x68] sm:$0xff] (!%p239_p2)  ;;  %v312_v31 = vld [vmem:[%s2034_s1 + $0x70] sm:$0xff] (!%p239_p2) }
   0xc   : > { %1461 = vmatprep.subr.bf16.mxu1 (!%p239_p2), %v1460_v17  ;;  %v1448_v30 = vpack.c.bf16 (!%p239_p2), %v311_v29, %v310_v28  ;;  %v313_v32 = vld [vmem:[%s2034_s1 + $0x78] sm:$0xff] (!%p239_p2)  ;;  %v552_v49 = vld [vmem:[%s2036_s3 + $0x30] sm:$0xff] (!%p239_p2)  ;;  %v554_v52 = vld [vmem:[%s2036_s3 + $0x40] sm:$0xff] (!%p239_p2) }
   0xd   : > { %s2042_s9 = smov (!%p271_p3, %s1135_s9), 31  ;;  %1431 = vmatpush3.bf16.msra.mxu0 %v1428_v5  ;;  %v1452_v33 = vpack.c.bf16 %v313_v32, %v312_v31  ;;  %v553_v50 = vld [vmem:[%s2036_s3 + $0x38] sm:$0xff]  ;;  %v555_v53 = vld [vmem:[%s2036_s3 + $0x48] sm:$0xff]  ;;  %v556_v55 = vld [vmem:[%s2036_s3 + $0x50] sm:$0xff] }
   0xe   : > { %s1136_s18 = sshll.u32 %s2042_s9, 3  ;;  %1433 = vmatprep.subr.bf16.mxu0 %v1432_v8  ;;  %v1468_v51 = vpack.c.bf16 %v553_v50, %v552_v49  ;;  %v1472_v54 = vpack.c.bf16 %v555_v53, %v554_v52  ;;  %v557_v56 = vld [vmem:[%s2036_s3 + $0x58] sm:$0xff]  ;;  %v558_v58 = vld [vmem:[%s2036_s3 + $0x60] sm:$0xff]  ;;  %v559_v59 = vld [vmem:[%s2036_s3 + $0x68] sm:$0xff] }
   0xf   : > { %s1766_s28 = scalar_lea.vmem %s2033_s0, %s1136_s18  ;;  %1463 = vmatpush3.bf16.msra.mxu1 %v1460_v17  ;;  %v1476_v57 = vpack.c.bf16 %v557_v56, %v556_v55  ;;  %v1480_v60 = vpack.c.bf16 %v559_v59, %v558_v58  ;;  %v560_v61 = vld [vmem:[%s2036_s3 + $0x70] sm:$0xff]  ;;  %v561_v62 = vld [vmem:[%s2036_s3 + $0x78] sm:$0xff]  ;;  %v794_v0 = vld [vmem:[%s2038_s5] sm:$0xff]  ;;  %s2009_s12 = scalar_lea.vmem %s2040_s7, %s1136_s18 }
  0x10   : > { %v282_v16 = vld [vmem:[%s1766_s28] sm:$0xff]  ;;  %1465 = vmatprep.subr.bf16.mxu1 %v1464_v24  ;;  %v283_v34 = vld [vmem:[%s1766_s28 + $0x8] sm:$0xff]  ;;  %v284_v35 = vld [vmem:[%s1766_s28 + $0x10] sm:$0xff]  ;;  %v1484_v63 = vpack.c.bf16 %v561_v62, %v560_v61 }
  0x11   : > { %1288 = vmatprep.mubr.f32.mxu0 %v282_v16  ;;  %1435 = vmatpush3.bf16.msra.mxu0 %v1432_v8  ;;  %v285_v36 = vld [vmem:[%s1766_s28 + $0x18] sm:$0xff]  ;;  %v286_v37 = vld [vmem:[%s1766_s28 + $0x20] sm:$0xff]  ;;  %v287_v38 = vld [vmem:[%s1766_s28 + $0x28] sm:$0xff] }
  0x12   : > { %1437 = vmatprep.subr.bf16.mxu0 %v1436_v18  ;;  %v288_v39 = vld [vmem:[%s1766_s28 + $0x30] sm:$0xff]  ;;  %v289_v40 = vld [vmem:[%s1766_s28 + $0x38] sm:$0xff]  ;;  %v290_v41 = vld [vmem:[%s1766_s28 + $0x40] sm:$0xff] }
  0x13   : > { %1467 = vmatpush3.bf16.msra.mxu1 %v1464_v24  ;;  %v291_v42 = vld [vmem:[%s1766_s28 + $0x48] sm:$0xff]  ;;  %v292_v43 = vld [vmem:[%s1766_s28 + $0x50] sm:$0xff]  ;;  %v293_v44 = vld [vmem:[%s1766_s28 + $0x58] sm:$0xff] }
  0x14   : > { %v294_v45 = vld [vmem:[%s1766_s28 + $0x60] sm:$0xff]  ;;  %v295_v46 = vld [vmem:[%s1766_s28 + $0x68] sm:$0xff]  ;;  %v296_v47 = vld [vmem:[%s1766_s28 + $0x70] sm:$0xff]  ;;  %1469 = vmatprep.subr.bf16.mxu1 %v1468_v51 }
  0x15   : > { %1439 = vmatpush3.bf16.msra.mxu0 %v1436_v18  ;;  %v297_v48 = vld [vmem:[%s1766_s28 + $0x78] sm:$0xff]  ;;  %v795_v1 = vld [vmem:[%s2038_s5 + $0x8] sm:$0xff]  ;;  %v796_v2 = vld [vmem:[%s2038_s5 + $0x10] sm:$0xff] }
  0x16   : > { %1441 = vmatprep.subr.bf16.mxu0 %v1440_v23  ;;  %v1859_v3 = vpack.c.bf16 %v795_v1, %v794_v0  ;;  %v797_v4 = vld [vmem:[%s2038_s5 + $0x18] sm:$0xff]  ;;  %v798_v6 = vld [vmem:[%s2038_s5 + $0x20] sm:$0xff]  ;;  %v799_v7 = vld [vmem:[%s2038_s5 + $0x28] sm:$0xff] }
  0x17   : > { %1471 = vmatpush3.bf16.msra.mxu1 %v1468_v51  ;;  %v1864_v5 = vpack.c.bf16 %v797_v4, %v796_v2  ;;  %v1876_v8 = vpack.c.bf16 %v799_v7, %v798_v6  ;;  %v1884_v9 = vld [vmem:[%s2035_s2] ss:$0 sm:$0xff] }
  0x18   : > { %1473 = vmatprep.subr.bf16.mxu1 %v1472_v54 }
  0x19   : > { %1443 = vmatpush3.bf16.msra.mxu0 %v1440_v23 }
  0x1a   : > { %1445 = vmatprep.subr.bf16.mxu0 %v1444_v27 }
  0x1b   : > { %1475 = vmatpush3.bf16.msra.mxu1 %v1472_v54 }
  0x1c   : > { %1477 = vmatprep.subr.bf16.mxu1 %v1476_v57 }
  0x1d   : > { %1447 = vmatpush3.bf16.msra.mxu0 %v1444_v27 }
  0x1e   : > { %1449 = vmatprep.subr.bf16.mxu0 %v1448_v30 }
  0x1f   : > { %1479 = vmatpush3.bf16.msra.mxu1 %v1476_v57 }
  0x20   : > { %1481 = vmatprep.subr.bf16.mxu1 %v1480_v60 }
  0x21   : > { %1451 = vmatpush3.bf16.msra.mxu0 %v1448_v30 }
  0x22   : > { %1453 = vmatprep.subr.bf16.mxu0 %v1452_v33 }
  0x23   : > { %1483 = vmatpush3.bf16.msra.mxu1 %v1480_v60 }
  0x24   : > { %1485 = vmatprep.subr.bf16.mxu1 %v1484_v63 }
  0x25   : > { %1455 = vmatpush3.bf16.msra.mxu0 %v1452_v33 }
  0x26   : > { %1489 = vmatprep.subr.bf16.mxu0 %v1859_v3 }
  0x27   : > { %1487 = vmatpush3.bf16.msra.mxu1 %v1484_v63 }
  0x28   : > { %1289 = vmatmul.mubr.f32.vlgmr.msra.gmra.mrb[0].mxu0 %v283_v34  ;;  %1520 = vmatprep.subr.bf16.mxu1 %v1859_v3 }
  0x29   : > { %1291 = vmatprep.mubr.f32.mxu0 %v284_v35  ;;  %1491 = vmatpush3.bf16.msra.mxu0 %v1859_v3 }
  0x2a   : > { %1493 = vmatprep.subr.bf16.mxu0 %v1864_v5 }
  0x2c   : > { %1292 = vmatmul.mubr.f32.gmra.mrb[2].mxu0 %v285_v36 }
  0x2d   : > { %1294 = vmatprep.mubr.f32.mxu0 %v286_v37  ;;  %1495 = vmatpush3.bf16.msra.mxu0 %v1864_v5 }
  0x2e   : > { %1497 = vmatprep.subr.bf16.mxu0 %v1876_v8 }
  0x30   : > { %1295 = vmatmul.mubr.f32.gmra.mrb[4].mxu0 %v287_v38 }
  0x31   : > { %1297 = vmatprep.mubr.f32.mxu0 %v288_v39  ;;  %1499 = vmatpush3.bf16.msra.mxu0 %v1876_v8 }
  0x34   : > { %1298 = vmatmul.mubr.f32.gmra.mrb[6].mxu0 %v289_v40 }
  0x35   : > { %1300 = vmatprep.mubr.f32.mxu0 %v290_v41 }
  0x38   : > { %1301 = vmatmul.mubr.f32.gmra.mrb[8].mxu0 %v291_v42 }
  0x39   : > { %1303 = vmatprep.mubr.f32.mxu0 %v292_v43 }
  0x3c   : > { %1304 = vmatmul.mubr.f32.gmra.mrb[10].mxu0 %v293_v44 }
  0x3d   : > { %1306 = vmatprep.mubr.f32.mxu0 %v294_v45 }
  0x40   : > { %1307 = vmatmul.mubr.f32.gmra.mrb[12].mxu0 %v295_v46 }
  0x41   : > { %1309 = vmatprep.mubr.f32.mxu0 %v296_v47 }
  0x44   : > { %1310 = vmatmul.mubr.f32.gmra.mrb[14].mxu0 %v297_v48 }
  0xfb   : > { %v1290_v10 = vpop.f32.mrb[0].mxu0 }
  0xfc   : > { %v393_v11 = vadd.f32 %v1290_v10, %v1884_v9  ;;  %v387_v12 = vpop.f32.mrb[1].mxu0 }
  0xfd   : > { %v388_v13 = vadd.f32 %v1884_v9, %v387_v12 }
  0xfe   : > { %v483_v14 = vmul.f32 0.70710677, %v393_v11  ;;  %v467_v42 = vmul.f32 0.5, %v393_v11 }
  0xff   : > { %v482_v15 = vmul.f32 0.70710677, %v388_v13  ;;  %v1293_v16 = vpop.f32.mrb[2].mxu0  ;;  %v466_v40 = vmul.f32 0.5, %v388_v13 }
 0x100   : > { %1544 = verf.f32 %v483_v14  ;;  %v403_v17 = vadd.f32 %v1293_v16, %v1884_v9  ;;  %v397_v18 = vpop.f32.mrb[3].mxu0 }
 0x101   : > { %1546 = verf.f32 %v482_v15  ;;  %v398_v19 = vadd.f32 %v1884_v9, %v397_v18 }
 0x102   : > { %v485_v20 = vmul.f32 0.70710677, %v403_v17  ;;  %v469_v56 = vmul.f32 0.5, %v403_v17 }
 0x103   : > { %v484_v21 = vmul.f32 0.70710677, %v398_v19  ;;  %v1296_v22 = vpop.f32.mrb[4].mxu0  ;;  %v468_v52 = vmul.f32 0.5, %v398_v19 }
 0x104   : > { %1548 = verf.f32 %v485_v20  ;;  %v413_v23 = vadd.f32 %v1296_v22, %v1884_v9  ;;  %v407_v24 = vpop.f32.mrb[5].mxu0 }
 0x105   : > { %1550 = verf.f32 %v484_v21  ;;  %v408_v25 = vadd.f32 %v1884_v9, %v407_v24 }
 0x106   : > { %v487_v26 = vmul.f32 0.70710677, %v413_v23  ;;  %v471_v10 = vmul.f32 0.5, %v413_v23 }
 0x107   : > { %v486_v27 = vmul.f32 0.70710677, %v408_v25  ;;  %v1299_v28 = vpop.f32.mrb[6].mxu0  ;;  %v470_v2 = vmul.f32 0.5, %v408_v25 }
 0x108   : > { %1552 = verf.f32 %v487_v26  ;;  %v1893_v29 = vadd.f32 %v1299_v28, %v1884_v9  ;;  %v417_v30 = vpop.f32.mrb[7].mxu0 }
 0x109   : > { %1554 = verf.f32 %v486_v27  ;;  %v418_v31 = vadd.f32 %v1884_v9, %v417_v30 }
 0x10a   : > { %v1545_v32 = vpop.eup %1544  ;;  %v489_v33 = vmul.f32 0.70710677, %v1893_v29  ;;  %v473_v23 = vmul.f32 0.5, %v1893_v29 }
 0x10b   : > { %v1547_v34 = vpop.eup %1546  ;;  %v515_v35 = vadd.f32 1.0, %v1545_v32  ;;  %v488_v36 = vmul.f32 0.70710677, %v418_v31  ;;  %v1302_v37 = vpop.f32.mrb[8].mxu0  ;;  %v472_v19 = vmul.f32 0.5, %v418_v31 }
 0x10c   : > { %1556 = verf.f32 %v489_v33  ;;  %v1898_v38 = vadd.f32 %v1302_v37, %v1884_v9  ;;  %v427_v39 = vpop.f32.mrb[9].mxu0  ;;  %v514_v41 = vadd.f32 1.0, %v1547_v34 }
 0x10d   : > { %1558 = verf.f32 %v488_v36  ;;  %v1901_v43 = vadd.f32 %v1884_v9, %v427_v39  ;;  %v531_v51 = vmul.f32 %v515_v35, %v467_v42 }
 0x10e   : > { %v1549_v44 = vpop.eup %1548  ;;  %v491_v45 = vmul.f32 0.70710677, %v1898_v38  ;;  %v530_v46 = vmul.f32 %v514_v41, %v466_v40  ;;  %v475_v29 = vmul.f32 0.5, %v1898_v38 }
 0x10f   : > { %v1551_v47 = vpop.eup %1550  ;;  %v517_v48 = vadd.f32 1.0, %v1549_v44  ;;  %v490_v49 = vmul.f32 0.70710677, %v1901_v43  ;;  %v1305_v50 = vpop.f32.mrb[10].mxu0  ;;  %v474_v32 = vmul.f32 0.5, %v1901_v43 }
 0x110   : > { %v516_v53 = vadd.f32 1.0, %v1551_v47  ;;  %1560 = verf.f32 %v491_v45  ;;  %v1906_v54 = vadd.f32 %v1305_v50, %v1884_v9  ;;  %v437_v55 = vpop.f32.mrb[11].mxu0  ;;  %1344 = vmatprep.mubr.f32.mxu1 %v530_v46 }
 0x111   : > { %1562 = verf.f32 %v490_v49  ;;  %v438_v57 = vadd.f32 %v1884_v9, %v437_v55  ;;  %1345 = vmatmul.mubr.f32.vlgmr.msra.gmra.mrb[0].mxu1 %v531_v51  ;;  %v533_v1 = vmul.f32 %v517_v48, %v469_v56 }
 0x112   : > { %v1553_v58 = vpop.eup %1552  ;;  %v493_v59 = vmul.f32 0.70710677, %v1906_v54  ;;  %v532_v60 = vmul.f32 %v516_v53, %v468_v52  ;;  %1528 = vmatpush3.bf16.msra.mxu1 %v1859_v3  ;;  %v477_v40 = vmul.f32 0.5, %v1906_v54 }
 0x113   : > { %v1555_v61 = vpop.eup %1554  ;;  %v519_v62 = vadd.f32 1.0, %v1553_v58  ;;  %v492_v63 = vmul.f32 0.70710677, %v438_v57  ;;  %v1308_v0 = vpop.f32.mrb[12].mxu0  ;;  %1521 = vmatprep.subr.bf16.mxu1 %v1864_v5  ;;  %v476_v39 = vmul.f32 0.5, %v438_v57  ;;  %v800_v58 = vld [vmem:[%s2038_s5 + $0x30] sm:$0xff] }
 0x114   : > { %v518_v4 = vadd.f32 1.0, %v1555_v61  ;;  %1564 = verf.f32 %v493_v59  ;;  %v453_v6 = vadd.f32 %v1308_v0, %v1884_v9  ;;  %v447_v7 = vpop.f32.mrb[13].mxu0  ;;  %1347 = vmatprep.mubr.f32.mxu1 %v532_v60  ;;  %v801_v59 = vld [vmem:[%s2038_s5 + $0x38] sm:$0xff]  ;;  %v802_v61 = vld [vmem:[%s2038_s5 + $0x40] sm:$0xff]  ;;  %v804_v0 = vld [vmem:[%s2038_s5 + $0x50] sm:$0xff] }
 0x115   : > { %1566 = verf.f32 %v492_v63  ;;  %v448_v11 = vadd.f32 %v1884_v9, %v447_v7  ;;  %1348 = vmatmul.mubr.f32.gmra.mrb[2].mxu1 %v533_v1  ;;  %v535_v18 = vmul.f32 %v519_v62, %v471_v10  ;;  %v1500_v60 = vpack.c.bf16 %v801_v59, %v800_v58  ;;  %v803_v62 = vld [vmem:[%s2038_s5 + $0x48] sm:$0xff]  ;;  %v805_v1 = vld [vmem:[%s2038_s5 + $0x58] sm:$0xff]  ;;  %v808_v10 = vld [vmem:[%s2038_s5 + $0x70] sm:$0xff] }
 0x116   : > { %v1557_v3 = vpop.eup %1556  ;;  %v495_v12 = vmul.f32 0.70710677, %v453_v6  ;;  %v534_v13 = vmul.f32 %v518_v4, %v470_v2  ;;  %1529 = vmatpush3.bf16.msra.mxu1 %v1864_v5  ;;  %v479_v47 = vmul.f32 0.5, %v453_v6  ;;  %v1504_v63 = vpack.c.bf16 %v803_v62, %v802_v61  ;;  %v806_v4 = vld [vmem:[%s2038_s5 + $0x60] sm:$0xff]  ;;  %v807_v6 = vld [vmem:[%s2038_s5 + $0x68] sm:$0xff] }
 0x117   : > { %v1559_v14 = vpop.eup %1558  ;;  %v521_v15 = vadd.f32 1.0, %v1557_v3  ;;  %v494_v16 = vmul.f32 0.70710677, %v448_v11  ;;  %v1311_v17 = vpop.f32.mrb[14].mxu0  ;;  %1522 = vmatprep.subr.bf16.mxu1 %v1876_v8  ;;  %v478_v46 = vmul.f32 0.5, %v448_v11  ;;  %1501 = vmatprep.subr.bf16.mxu0 %v1500_v60  ;;  %v1508_v2 = vpack.c.bf16 %v805_v1, %v804_v0  ;;  %v809_v11 = vld [vmem:[%s2038_s5 + $0x78] sm:$0xff] }
 0x118   : > { %v520_v20 = vadd.f32 1.0, %v1559_v14  ;;  %1568 = verf.f32 %v495_v12  ;;  %v463_v21 = vadd.f32 %v1311_v17, %v1884_v9  ;;  %v457_v22 = vpop.f32.mrb[15].mxu0  ;;  %1350 = vmatprep.mubr.f32.mxu1 %v534_v13  ;;  %1503 = vmatpush3.bf16.msra.mxu0 %v1500_v60  ;;  %v1512_v7 = vpack.c.bf16 %v807_v6, %v806_v4  ;;  %v1956_v12 = vld [vmem:[%s2037_s4] ss:$0 sm:$0xff] }
 0x119   : > { %1570 = verf.f32 %v494_v16  ;;  %v458_v24 = vadd.f32 %v1884_v9, %v457_v22  ;;  %1351 = vmatmul.mubr.f32.gmra.mrb[4].mxu1 %v535_v18  ;;  %v537_v31 = vmul.f32 %v521_v15, %v473_v23  ;;  %1505 = vmatprep.subr.bf16.mxu0 %v1504_v63  ;;  %v1516_v3 = vpack.c.bf16 %v809_v11, %v808_v10 }
 0x11a   : > { %v1561_v5 = vpop.eup %1560  ;;  %v497_v25 = vmul.f32 0.70710677, %v463_v21  ;;  %v536_v26 = vmul.f32 %v520_v20, %v472_v19  ;;  %1530 = vmatpush3.bf16.msra.mxu1 %v1876_v8  ;;  %v481_v54 = vmul.f32 0.5, %v463_v21 }
 0x11b   : > { %v1563_v27 = vpop.eup %1562  ;;  %v523_v28 = vadd.f32 1.0, %v1561_v5  ;;  %v496_v30 = vmul.f32 0.70710677, %v458_v24  ;;  %v480_v53 = vmul.f32 0.5, %v458_v24  ;;  %1523 = vmatprep.subr.bf16.mxu1 %v1500_v60 }
 0x11c   : > { %v522_v33 = vadd.f32 1.0, %v1563_v27  ;;  %1572 = verf.f32 %v497_v25  ;;  %1353 = vmatprep.mubr.f32.mxu1 %v536_v26  ;;  %1507 = vmatpush3.bf16.msra.mxu0 %v1504_v63 }
 0x11d   : > { %1574 = verf.f32 %v496_v30  ;;  %1354 = vmatmul.mubr.f32.gmra.mrb[6].mxu1 %v537_v31  ;;  %v539_v37 = vmul.f32 %v523_v28, %v475_v29  ;;  %1509 = vmatprep.subr.bf16.mxu0 %v1508_v2 }
 0x11e   : > { %v1565_v9 = vpop.eup %1564  ;;  %v538_v34 = vmul.f32 %v522_v33, %v474_v32  ;;  %1531 = vmatpush3.bf16.msra.mxu1 %v1500_v60 }
 0x11f   : > { %v1567_v35 = vpop.eup %1566  ;;  %v525_v36 = vadd.f32 1.0, %v1565_v9  ;;  %1524 = vmatprep.subr.bf16.mxu1 %v1504_v63 }
 0x120   : > { %v524_v8 = vadd.f32 1.0, %v1567_v35  ;;  %1356 = vmatprep.mubr.f32.mxu1 %v538_v34  ;;  %1511 = vmatpush3.bf16.msra.mxu0 %v1508_v2 }
 0x121   : > { %1357 = vmatmul.mubr.f32.gmra.mrb[8].mxu1 %v539_v37  ;;  %v541_v45 = vmul.f32 %v525_v36, %v477_v40  ;;  %1513 = vmatprep.subr.bf16.mxu0 %v1512_v7 }
 0x122   : > { %v1569_v41 = vpop.eup %1568  ;;  %v540_v42 = vmul.f32 %v524_v8, %v476_v39  ;;  %1532 = vmatpush3.bf16.msra.mxu1 %v1504_v63 }
 0x123   : > { %v1571_v43 = vpop.eup %1570  ;;  %v527_v44 = vadd.f32 1.0, %v1569_v41  ;;  %1525 = vmatprep.subr.bf16.mxu1 %v1508_v2 }
 0x124   : > { %v526_v38 = vadd.f32 1.0, %v1571_v43  ;;  %1359 = vmatprep.mubr.f32.mxu1 %v540_v42  ;;  %1515 = vmatpush3.bf16.msra.mxu0 %v1512_v7 }
 0x125   : > { %1360 = vmatmul.mubr.f32.gmra.mrb[10].mxu1 %v541_v45  ;;  %v543_v52 = vmul.f32 %v527_v44, %v479_v47  ;;  %1517 = vmatprep.subr.bf16.mxu0 %v1516_v3 }
 0x126   : > { %v1573_v48 = vpop.eup %1572  ;;  %v542_v49 = vmul.f32 %v526_v38, %v478_v46  ;;  %1533 = vmatpush3.bf16.msra.mxu1 %v1508_v2 }
 0x127   : > { %v1575_v50 = vpop.eup %1574  ;;  %v529_v51 = vadd.f32 1.0, %v1573_v48  ;;  %1526 = vmatprep.subr.bf16.mxu1 %v1512_v7 }
 0x128   : > { %v528_v55 = vadd.f32 1.0, %v1575_v50  ;;  %1362 = vmatprep.mubr.f32.mxu1 %v542_v49  ;;  %1519 = vmatpush3.bf16.msra.mxu0 %v1516_v3 }
 0x129   : > { %1363 = vmatmul.mubr.f32.gmra.mrb[12].mxu1 %v543_v52  ;;  %v545_v57 = vmul.f32 %v529_v51, %v481_v54 }
 0x12a   : > { %v544_v56 = vmul.f32 %v528_v55, %v480_v53  ;;  %1534 = vmatpush3.bf16.msra.mxu1 %v1512_v7 }
 0x12b   : > { %1527 = vmatprep.subr.bf16.mxu1 %v1516_v3 }
 0x12c   : > { %1365 = vmatprep.mubr.f32.mxu1 %v544_v56 }
 0x12d   : > { %1366 = vmatmul.mubr.f32.gmra.mrb[14].mxu1 %v545_v57 }
 0x12e   : > { %1535 = vmatpush3.bf16.msra.mxu1 %v1516_v3 }
 0x1e4   : > { %v1346_v13 = vpop.f32.mrb[0].mxu1 }
 0x1e5   : > { %v641_v14 = vadd.f32 %v1346_v13, %v1956_v12  ;;  %v635_v15 = vpop.f32.mrb[1].mxu1 }
 0x1e6   : > { %v636_v16 = vadd.f32 %v1956_v12, %v635_v15 }
 0x1e7   : > { %v731_v17 = vmul.f32 0.70710677, %v641_v14  ;;  %v715_v43 = vmul.f32 0.5, %v641_v14 }
 0x1e8   : > { %v730_v18 = vmul.f32 0.70710677, %v636_v16  ;;  %v1349_v19 = vpop.f32.mrb[2].mxu1  ;;  %v714_v8 = vmul.f32 0.5, %v636_v16 }
 0x1e9   : > { %1576 = verf.f32 %v731_v17  ;;  %v651_v20 = vadd.f32 %v1349_v19, %v1956_v12  ;;  %v645_v21 = vpop.f32.mrb[3].mxu1 }
 0x1ea   : > { %1578 = verf.f32 %v730_v18  ;;  %v646_v22 = vadd.f32 %v1956_v12, %v645_v21 }
 0x1eb   : > { %v733_v23 = vmul.f32 0.70710677, %v651_v20  ;;  %v717_v56 = vmul.f32 0.5, %v651_v20 }
 0x1ec   : > { %v732_v24 = vmul.f32 0.70710677, %v646_v22  ;;  %v1352_v5 = vpop.f32.mrb[4].mxu1  ;;  %v716_v52 = vmul.f32 0.5, %v646_v22 }
 0x1ed   : > { %1580 = verf.f32 %v733_v23  ;;  %v661_v25 = vadd.f32 %v1352_v5, %v1956_v12  ;;  %v655_v26 = vpop.f32.mrb[5].mxu1 }
 0x1ee   : > { %1582 = verf.f32 %v732_v24  ;;  %v656_v27 = vadd.f32 %v1956_v12, %v655_v26 }
 0x1ef   : > { %v735_v28 = vmul.f32 0.70710677, %v661_v25  ;;  %v719_v10 = vmul.f32 0.5, %v661_v25 }
 0x1f0   : > { %v734_v30 = vmul.f32 0.70710677, %v656_v27  ;;  %v1355_v31 = vpop.f32.mrb[6].mxu1  ;;  %v718_v2 = vmul.f32 0.5, %v656_v27 }
 0x1f1   : > { %1584 = verf.f32 %v735_v28  ;;  %v1965_v32 = vadd.f32 %v1355_v31, %v1956_v12  ;;  %v665_v33 = vpop.f32.mrb[7].mxu1 }
 0x1f2   : > { %1586 = verf.f32 %v734_v30  ;;  %v666_v29 = vadd.f32 %v1956_v12, %v665_v33 }
 0x1f3   : > { %v1577_v9 = vpop.eup %1576  ;;  %v737_v34 = vmul.f32 0.70710677, %v1965_v32  ;;  %v721_v24 = vmul.f32 0.5, %v1965_v32 }
 0x1f4   : > { %v1579_v35 = vpop.eup %1578  ;;  %v763_v36 = vadd.f32 1.0, %v1577_v9  ;;  %v736_v37 = vmul.f32 0.70710677, %v666_v29  ;;  %v1358_v39 = vpop.f32.mrb[8].mxu1  ;;  %v720_v20 = vmul.f32 0.5, %v666_v29 }
 0x1f5   : > { %v762_v40 = vadd.f32 1.0, %v1579_v35  ;;  %1588 = verf.f32 %v737_v34  ;;  %v1970_v41 = vadd.f32 %v1358_v39, %v1956_v12  ;;  %v675_v42 = vpop.f32.mrb[9].mxu1 }
 0x1f6   : > { %1590 = verf.f32 %v736_v37  ;;  %v676_v44 = vadd.f32 %v1956_v12, %v675_v42  ;;  %v779_v48 = vmul.f32 %v763_v36, %v715_v43 }
 0x1f7   : > { %v1581_v45 = vpop.eup %1580  ;;  %v739_v46 = vmul.f32 0.70710677, %v1970_v41  ;;  %v778_v38 = vmul.f32 %v762_v40, %v714_v8  ;;  %v723_v34 = vmul.f32 0.5, %v1970_v41 }
 0x1f8   : > { %v1583_v47 = vpop.eup %1582  ;;  %v765_v49 = vadd.f32 1.0, %v1581_v45  ;;  %v738_v50 = vmul.f32 0.70710677, %v676_v44  ;;  %v1361_v51 = vpop.f32.mrb[10].mxu1  ;;  %v722_v29 = vmul.f32 0.5, %v676_v44 }
 0x1f9   : > { %v764_v53 = vadd.f32 1.0, %v1583_v47  ;;  %1592 = verf.f32 %v739_v46  ;;  %v1975_v55 = vadd.f32 %v1361_v51, %v1956_v12  ;;  %v685_v54 = vpop.f32.mrb[11].mxu1  ;;  %1400 = vmatprep.mubr.f32.mxu0 %v778_v38 }
 0x1fa   : > { %1594 = verf.f32 %v738_v50  ;;  %v686_v57 = vadd.f32 %v1956_v12, %v685_v54  ;;  %1401 = vmatmul.mubr.f32.vlgmr.msra.gmra.mrb[16].mxu0 %v779_v48  ;;  %v781_v1 = vmul.f32 %v765_v49, %v717_v56 }
 0x1fb   : > { %v1585_v58 = vpop.eup %1584  ;;  %v741_v59 = vmul.f32 0.70710677, %v1975_v55  ;;  %v780_v60 = vmul.f32 %v764_v53, %v716_v52  ;;  %v725_v40 = vmul.f32 0.5, %v1975_v55 }
 0x1fc   : > { %v1587_v61 = vpop.eup %1586  ;;  %v767_v62 = vadd.f32 1.0, %v1585_v58  ;;  %v740_v63 = vmul.f32 0.70710677, %v686_v57  ;;  %v1364_v0 = vpop.f32.mrb[12].mxu1  ;;  %v724_v39 = vmul.f32 0.5, %v686_v57 }
 0x1fd   : > { %v766_v4 = vadd.f32 1.0, %v1587_v61  ;;  %1596 = verf.f32 %v741_v59  ;;  %v701_v6 = vadd.f32 %v1364_v0, %v1956_v12  ;;  %v695_v7 = vpop.f32.mrb[13].mxu1  ;;  %1403 = vmatprep.mubr.f32.mxu0 %v780_v60  ;;  %v1989_v58 = vld [vmem:[%s2039_s6] ss:$0 sm:$0xff] }
 0x1fe   : > { %1598 = verf.f32 %v740_v63  ;;  %v696_v11 = vadd.f32 %v1956_v12, %v695_v7  ;;  %1404 = vmatmul.mubr.f32.gmra.mrb[18].mxu0 %v781_v1  ;;  %v783_v19 = vmul.f32 %v767_v62, %v719_v10 }
 0x1ff   : > { %v1589_v3 = vpop.eup %1588  ;;  %v743_v13 = vmul.f32 0.70710677, %v701_v6  ;;  %v782_v14 = vmul.f32 %v766_v4, %v718_v2  ;;  %v727_v47 = vmul.f32 0.5, %v701_v6 }
 0x200   : > { %v1591_v15 = vpop.eup %1590  ;;  %v769_v16 = vadd.f32 1.0, %v1589_v3  ;;  %v742_v17 = vmul.f32 0.70710677, %v696_v11  ;;  %v1367_v18 = vpop.f32.mrb[14].mxu1  ;;  %v726_v38 = vmul.f32 0.5, %v696_v11 }
 0x201   : > { %v768_v21 = vadd.f32 1.0, %v1591_v15  ;;  %1600 = verf.f32 %v743_v13  ;;  %v711_v22 = vadd.f32 %v1367_v18, %v1956_v12  ;;  %v705_v23 = vpop.f32.mrb[15].mxu1  ;;  %1406 = vmatprep.mubr.f32.mxu0 %v782_v14 }
 0x202   : > { %1602 = verf.f32 %v742_v17  ;;  %v706_v5 = vadd.f32 %v1956_v12, %v705_v23  ;;  %1407 = vmatmul.mubr.f32.gmra.mrb[20].mxu0 %v783_v19  ;;  %v785_v33 = vmul.f32 %v769_v16, %v721_v24 }
 0x203   : > { %v1593_v25 = vpop.eup %1592  ;;  %v745_v26 = vmul.f32 0.70710677, %v711_v22  ;;  %v784_v27 = vmul.f32 %v768_v21, %v720_v20  ;;  %v729_v55 = vmul.f32 0.5, %v711_v22 }
 0x204   : > { %v1595_v28 = vpop.eup %1594  ;;  %v771_v30 = vadd.f32 1.0, %v1593_v25  ;;  %v744_v31 = vmul.f32 0.70710677, %v706_v5  ;;  %v728_v53 = vmul.f32 0.5, %v706_v5 }
 0x205   : > { %v770_v9 = vadd.f32 1.0, %v1595_v28  ;;  %1604 = verf.f32 %v745_v26  ;;  %1409 = vmatprep.mubr.f32.mxu0 %v784_v27 }
 0x206   : > { %1606 = verf.f32 %v744_v31  ;;  %1410 = vmatmul.mubr.f32.gmra.mrb[22].mxu0 %v785_v33  ;;  %v787_v12 = vmul.f32 %v771_v30, %v723_v34 }
 0x207   : > { %v1597_v32 = vpop.eup %1596  ;;  %v786_v35 = vmul.f32 %v770_v9, %v722_v29 }
 0x208   : > { %v1599_v36 = vpop.eup %1598  ;;  %v773_v37 = vadd.f32 1.0, %v1597_v32 }
 0x209   : > { %v772_v8 = vadd.f32 1.0, %v1599_v36  ;;  %1412 = vmatprep.mubr.f32.mxu1 %v786_v35 }
 0x20a   : > { %1413 = vmatmul.mubr.f32.vlgmr.msra.gmra.mrb[16].mxu1 %v787_v12  ;;  %v789_v46 = vmul.f32 %v773_v37, %v725_v40 }
 0x20b   : > { %v1601_v42 = vpop.eup %1600  ;;  %v788_v43 = vmul.f32 %v772_v8, %v724_v39 }
 0x20c   : > { %v1603_v44 = vpop.eup %1602  ;;  %v775_v45 = vadd.f32 1.0, %v1601_v42 }
 0x20d   : > { %v774_v41 = vadd.f32 1.0, %v1603_v44  ;;  %1415 = vmatprep.mubr.f32.mxu1 %v788_v43 }
 0x20e   : > { %1416 = vmatmul.mubr.f32.gmra.mrb[18].mxu1 %v789_v46  ;;  %v791_v52 = vmul.f32 %v775_v45, %v727_v47 }
 0x20f   : > { %v1605_v48 = vpop.eup %1604  ;;  %v790_v49 = vmul.f32 %v774_v41, %v726_v38 }
 0x210   : > { %v1607_v50 = vpop.eup %1606  ;;  %v777_v51 = vadd.f32 1.0, %v1605_v48 }
 0x211   : > { %v776_v54 = vadd.f32 1.0, %v1607_v50  ;;  %1418 = vmatprep.mubr.f32.mxu1 %v790_v49 }
 0x212   : > { %1419 = vmatmul.mubr.f32.gmra.mrb[20].mxu1 %v791_v52  ;;  %v793_v57 = vmul.f32 %v777_v51, %v729_v55 }
 0x213   : > { %v792_v56 = vmul.f32 %v776_v54, %v728_v53 }
 0x215   : > { %1421 = vmatprep.mubr.f32.mxu1 %v792_v56 }
 0x216   : > { %1422 = vmatmul.mubr.f32.gmra.mrb[22].mxu1 %v793_v57 }
 0x2cd   : > { %v1402_v59 = vpop.f32.mrb[16].mxu0 }
 0x2ce   : > { %v889_v60 = vadd.f32 %v1402_v59, %v1989_v58  ;;  %v883_v61 = vpop.f32.mrb[17].mxu0 }
 0x2cf   : > { %v884_v62 = vadd.f32 %v1989_v58, %v883_v61 }
 0x2d0   : > { %v1143_v63 = vmul.f32 -1.442695, %v889_v60 }
 0x2d1   : > { %v1142_v0 = vmul.f32 -1.442695, %v884_v62  ;;  %v1405_v1 = vpop.f32.mrb[18].mxu0 }
 0x2d2   : > { %1608 = vpow2.f32 %v1143_v63  ;;  %v899_v2 = vadd.f32 %v1405_v1, %v1989_v58  ;;  %v893_v4 = vpop.f32.mrb[19].mxu0 }
 0x2d3   : > { %1610 = vpow2.f32 %v1142_v0  ;;  %v894_v6 = vadd.f32 %v1989_v58, %v893_v4 }
 0x2d4   : > { %v1145_v7 = vmul.f32 -1.442695, %v899_v2 }
 0x2d5   : > { %v1144_v10 = vmul.f32 -1.442695, %v894_v6  ;;  %v1408_v11 = vpop.f32.mrb[20].mxu0 }
 0x2d6   : > { %1612 = vpow2.f32 %v1145_v7  ;;  %v909_v3 = vadd.f32 %v1408_v11, %v1989_v58  ;;  %v903_v13 = vpop.f32.mrb[21].mxu0 }
 0x2d7   : > { %1614 = vpow2.f32 %v1144_v10  ;;  %v904_v14 = vadd.f32 %v1989_v58, %v903_v13 }
 0x2d8   : > { %v1147_v15 = vmul.f32 -1.442695, %v909_v3 }
 0x2d9   : > { %v1146_v16 = vmul.f32 -1.442695, %v904_v14  ;;  %v1411_v17 = vpop.f32.mrb[22].mxu0 }
 0x2da   : > { %1616 = vpow2.f32 %v1147_v15  ;;  %v919_v18 = vadd.f32 %v1411_v17, %v1989_v58  ;;  %v913_v19 = vpop.f32.mrb[23].mxu0 }
 0x2db   : > { %1618 = vpow2.f32 %v1146_v16  ;;  %v914_v20 = vadd.f32 %v1989_v58, %v913_v19 }
 0x2dc   : > { %v1609_v21 = vpop.eup %1608  ;;  %v1149_v22 = vmul.f32 -1.442695, %v919_v18 }
 0x2dd   : > { %v1611_v23 = vpop.eup %1610  ;;  %v1011_v24 = vadd.f32 1.0, %v1609_v21  ;;  %v1148_v5 = vmul.f32 -1.442695, %v914_v20  ;;  %v1414_v25 = vpop.f32.mrb[16].mxu1 }
 0x2de   : > { %v1010_v26 = vadd.f32 1.0, %v1611_v23  ;;  %1620 = vpow2.f32 %v1149_v22  ;;  %v929_v27 = vadd.f32 %v1414_v25, %v1989_v58  ;;  %v923_v28 = vpop.f32.mrb[17].mxu1 }
 0x2df   : > { %1622 = vrcp.f32 %v1011_v24  ;;  %v924_v30 = vadd.f32 %v1989_v58, %v923_v28 }
 0x2e0   : > { %v1613_v31 = vpop.eup %1612  ;;  %1624 = vrcp.f32 %v1010_v26  ;;  %v1151_v33 = vmul.f32 -1.442695, %v929_v27 }
 0x2e1   : > { %v1615_v29 = vpop.eup %1614  ;;  %v1013_v9 = vadd.f32 1.0, %v1613_v31  ;;  %1626 = vpow2.f32 %v1148_v5  ;;  %v1150_v34 = vmul.f32 -1.442695, %v924_v30  ;;  %v1417_v32 = vpop.f32.mrb[18].mxu1 }
 0x2e2   : > { %v1012_v35 = vadd.f32 1.0, %v1615_v29  ;;  %1628 = vpow2.f32 %v1151_v33  ;;  %v939_v36 = vadd.f32 %v1417_v32, %v1989_v58  ;;  %v933_v12 = vpop.f32.mrb[19].mxu1 }
 0x2e3   : > { %1630 = vrcp.f32 %v1013_v9  ;;  %v934_v37 = vadd.f32 %v1989_v58, %v933_v12 }
 0x2e4   : > { %v1617_v39 = vpop.eup %1616  ;;  %1632 = vrcp.f32 %v1012_v35  ;;  %v1153_v8 = vmul.f32 -1.442695, %v939_v36 }
 0x2e5   : > { %v1619_v40 = vpop.eup %1618  ;;  %v1015_v42 = vadd.f32 1.0, %v1617_v39  ;;  %1634 = vpow2.f32 %v1150_v34  ;;  %v1152_v43 = vmul.f32 -1.442695, %v934_v37  ;;  %v1420_v44 = vpop.f32.mrb[20].mxu1 }
 0x2e6   : > { %v1014_v45 = vadd.f32 1.0, %v1619_v40  ;;  %1636 = vpow2.f32 %v1153_v8  ;;  %v949_v46 = vadd.f32 %v1420_v44, %v1989_v58  ;;  %v943_v38 = vpop.f32.mrb[21].mxu1 }
 0x2e7   : > { %1638 = vrcp.f32 %v1015_v42  ;;  %v944_v41 = vadd.f32 %v1989_v58, %v943_v38 }
 0x2e8   : > { %v1621_v47 = vpop.eup %1620  ;;  %1640 = vrcp.f32 %v1014_v45  ;;  %v1155_v48 = vmul.f32 -1.442695, %v949_v46 }
 0x2e9   : > { %v1623_v49 = vpop.eup %1622  ;;  %v1017_v50 = vadd.f32 1.0, %v1621_v47  ;;  %1642 = vpow2.f32 %v1152_v43  ;;  %v1154_v51 = vmul.f32 -1.442695, %v944_v41  ;;  %v1423_v52 = vpop.f32.mrb[22].mxu1 }
 0x2ea   : > { %v1625_v53 = vpop.eup %1624  ;;  %1059 = vst [vmem:[%s2009_s12 + $0x8] sm:$0xff] %v1623_v49  ;;  %1644 = vpow2.f32 %v1155_v48  ;;  %v959_v54 = vadd.f32 %v1423_v52, %v1989_v58  ;;  %v953_v55 = vpop.f32.mrb[23].mxu1 }
 0x2eb   : > { %v1627_v56 = vpop.eup %1626  ;;  %1058 = vst [vmem:[%s2009_s12] sm:$0xff] %v1625_v53  ;;  %1646 = vrcp.f32 %v1017_v50  ;;  %v954_v57 = vadd.f32 %v1989_v58, %v953_v55 }
 0x2ec   : > { %v1629_v59 = vpop.eup %1628  ;;  %v1016_v60 = vadd.f32 1.0, %v1627_v56  ;;  %1648 = vpow2.f32 %v1154_v51  ;;  %v1157_v61 = vmul.f32 -1.442695, %v959_v54 }
 0x2ed   : > { %v1631_v62 = vpop.eup %1630  ;;  %v1019_v63 = vadd.f32 1.0, %v1629_v59  ;;  %v1156_v0 = vmul.f32 -1.442695, %v954_v57 }
 0x2ee   : > { %v1633_v1 = vpop.eup %1632  ;;  %1061 = vst [vmem:[%s2009_s12 + $0x18] sm:$0xff] %v1631_v62  ;;  %1650 = vrcp.f32 %v1016_v60 }
 0x2ef   : > { %v1635_v2 = vpop.eup %1634  ;;  %1060 = vst [vmem:[%s2009_s12 + $0x10] sm:$0xff] %v1633_v1  ;;  %1652 = vrcp.f32 %v1019_v63 }
 0x2f0   : > { %v1637_v4 = vpop.eup %1636  ;;  %v1018_v6 = vadd.f32 1.0, %v1635_v2  ;;  %1654 = vpow2.f32 %v1157_v61 }
 0x2f1   : > { %v1639_v58 = vpop.eup %1638  ;;  %v1021_v7 = vadd.f32 1.0, %v1637_v4  ;;  %1656 = vpow2.f32 %v1156_v0 }
 0x2f2   : > { %v1641_v10 = vpop.eup %1640  ;;  %1063 = vst [vmem:[%s2009_s12 + $0x28] sm:$0xff] %v1639_v58  ;;  %1658 = vrcp.f32 %v1018_v6 }
 0x2f3   : > { %v1643_v11 = vpop.eup %1642  ;;  %1062 = vst [vmem:[%s2009_s12 + $0x20] sm:$0xff] %v1641_v10  ;;  %1660 = vrcp.f32 %v1021_v7 }
 0x2f4   : > { %v1645_v3 = vpop.eup %1644  ;;  %v1020_v13 = vadd.f32 1.0, %v1643_v11 }
 0x2f5   : > { %v1647_v14 = vpop.eup %1646  ;;  %v1023_v15 = vadd.f32 1.0, %v1645_v3 }
 0x2f6   : > { %v1649_v16 = vpop.eup %1648  ;;  %1065 = vst [vmem:[%s2009_s12 + $0x38] sm:$0xff] %v1647_v14  ;;  %1662 = vrcp.f32 %v1020_v13 }
 0x2f7   : > { %1664 = vrcp.f32 %v1023_v15  ;;  %v1022_v17 = vadd.f32 1.0, %v1649_v16 }
 0x2f8   : > { %v1651_v18 = vpop.eup %1650 }
 0x2f9   : > { %v1653_v19 = vpop.eup %1652  ;;  %1064 = vst [vmem:[%s2009_s12 + $0x30] sm:$0xff] %v1651_v18  ;;  %1666 = vrcp.f32 %v1022_v17 }
 0x2fa   : > { %v1655_v20 = vpop.eup %1654  ;;  %1067 = vst [vmem:[%s2009_s12 + $0x48] sm:$0xff] %v1653_v19 }
 0x2fb   : > { %v1657_v21 = vpop.eup %1656  ;;  %v1025_v22 = vadd.f32 1.0, %v1655_v20 }
 0x2fc   : > { %v1659_v23 = vpop.eup %1658  ;;  %v1024_v24 = vadd.f32 1.0, %v1657_v21 }
 0x2fd   : > { %v1661_v5 = vpop.eup %1660  ;;  %1066 = vst [vmem:[%s2009_s12 + $0x40] sm:$0xff] %v1659_v23  ;;  %1668 = vrcp.f32 %v1025_v22 }
 0x2fe   : > { %1069 = vst [vmem:[%s2009_s12 + $0x58] sm:$0xff] %v1661_v5  ;;  %1670 = vrcp.f32 %v1024_v24 }
 0x300   : > { %v1663_v25 = vpop.eup %1662 }
 0x301   : > { %v1665_v26 = vpop.eup %1664  ;;  %1068 = vst [vmem:[%s2009_s12 + $0x50] sm:$0xff] %v1663_v25 }
 0x302   : > { %1071 = vst [vmem:[%s2009_s12 + $0x68] sm:$0xff] %v1665_v26 }
 0x303   : > { %v1667_v27 = vpop.eup %1666 }
 0x304   : > { %1070 = vst [vmem:[%s2009_s12 + $0x60] sm:$0xff] %v1667_v27 }
 0x307   : > { %v1669_v28 = vpop.eup %1668 }
 0x308   : > { %v1671_v30 = vpop.eup %1670  ;;  %1073 = vst [vmem:[%s2009_s12 + $0x78] sm:$0xff] %v1669_v28 }
 0x309   : > { %1072 = vst [vmem:[%s2009_s12 + $0x70] sm:$0xff] %v1671_v30 }
 0x30a PF: > { %s17_s24 = sadd.s32 1, %s1678_s24  }
 0x30b   : > { %p14_p4 = scmp.ge.s32.totalorder %s17_s24, 4  }
 0x30d   :  { %16 = sbr.rel (!%p14_p4) target bundleno = 1 (0x1), region = 78 }

</bundles_post_ra>
